<compile_context>
chip_gen: v5e
topology: v5e:2x2
jax: 0.10.0
libtpu: 0.0.40
codegen_flags: <defaults>
</compile_context>

<pallas_src>
import functools
import math

import jax
import jax.numpy as jnp
from jax.experimental import pallas as pl
from jax.experimental.pallas import tpu as pltpu

_LANE = 128
_MIB = 1024 * 1024


def _logit_transform_kernel(x_ref, z_ref, ld_ref, *, alpha, log_1m_alpha):
    x = x_ref[...].astype(jnp.float32)
    # x_affine = a/2 + (1-a)*x ; 1 - x_affine == a/2 + (1-a)*(1-x) (exact algebraically,
    # avoids cancellation as x -> 1). Both logs hit the EUP slot, which has slack.
    x_affine = alpha / 2.0 + (1.0 - alpha) * x
    one_minus_xa = alpha / 2.0 + (1.0 - alpha) * (1.0 - x)
    log_xa = jnp.log(x_affine)
    log_1m_xa = jnp.log(one_minus_xa)
    z_ref[...] = (log_xa - log_1m_xa).astype(z_ref.dtype)
    ld_ref[...] = (log_1m_alpha - log_xa - log_1m_xa).astype(ld_ref.dtype)


def _pick_width(n):
    """Largest lane-dense width (multiple of 128) dividing n, capped at 4096."""
    for w in (4096, 2048, 1024, 512, 256, 128):
        if n % w == 0:
            return w
    return _LANE


def _choose_block_rows(rows, row_bytes_vmem, sublane_pack, target_block_bytes):
    """Pick a row-block size (~target bytes), keeping tiling legal and >=2 grid steps."""
    block_rows = max(1, target_block_bytes // max(1, row_bytes_vmem))
    if block_rows >= rows:
        block_rows = rows                       # full extent: always legal
    else:
        block_rows = max(sublane_pack, (block_rows // sublane_pack) * sublane_pack)
        block_rows = min(block_rows, rows)
    # Guarantee >= 2 grid steps when possible so both of v7x's TensorCores get work.
    if rows > sublane_pack and pl.cdiv(rows, block_rows) < 2:
        half = pl.cdiv(rows, 2)
        block_rows = min(rows, pl.cdiv(half, sublane_pack) * sublane_pack)
    return block_rows


def _run(x2d, dtype, alpha, block_rows, total_elems, itemsize):
    rows, width = x2d.shape
    grid = (pl.cdiv(rows, block_rows),)

    kernel = functools.partial(
        _logit_transform_kernel,
        alpha=float(alpha),
        log_1m_alpha=float(math.log(1.0 - float(alpha))),
    )

    block = pl.BlockSpec((block_rows, width), lambda i: (i, 0))

    # Scoped-VMEM budget: 6 x tile (1 input + 2 outputs, double-buffered) + headroom.
    width_padded = pl.cdiv(width, _LANE) * _LANE
    block_bytes = block_rows * width_padded * itemsize
    vmem_limit = int(min(56 * _MIB, max(32 * _MIB, 6 * block_bytes + 16 * _MIB)))

    cost = pl.CostEstimate(
        flops=6 * total_elems,
        transcendentals=2 * total_elems,
        bytes_accessed=3 * total_elems * itemsize,
    )

    return pl.pallas_call(
        kernel,
        out_shape=(
            jax.ShapeDtypeStruct((rows, width), dtype),
            jax.ShapeDtypeStruct((rows, width), dtype),
        ),
        grid_spec=pl.GridSpec(
            grid=grid,
            in_specs=[block],
            out_specs=(
                pl.BlockSpec((block_rows, width), lambda i: (i, 0)),
                pl.BlockSpec((block_rows, width), lambda i: (i, 0)),
            ),
        ),
        compiler_params=pltpu.CompilerParams(
            dimension_semantics=("parallel",),
            vmem_limit_bytes=vmem_limit,
        ),
        cost_estimate=cost,
    )(x2d)


def logit_transform(x, alpha, *, target_block_bytes=4 * _MIB):
    """Pallas implementation of LogitTransform.forward. Returns (z, log_dz_by_dx)."""
    orig_shape = x.shape
    dtype = x.dtype
    itemsize = jnp.dtype(dtype).itemsize
    sublane_pack = 8 * max(1, 4 // itemsize)    # 8 for f32, 16 for bf16, 32 for int8/fp8
    n = x.size

    if n == 0:
        z = jnp.zeros(orig_shape, dtype)
        return z, z

    # ---- Fast path: lane-aligned total size -> dense 2-D slab, free reshapes.
    if n % _LANE == 0:
        width = _pick_width(n)
        rows = n // width
        x2d = x.reshape(rows, width)
        block_rows = _choose_block_rows(rows, width * itemsize, sublane_pack,
                                        target_block_bytes)
        z2d, ld2d = _run(x2d, dtype, alpha, block_rows, n, itemsize)
        return z2d.reshape(orig_shape), ld2d.reshape(orig_shape)

    # ---- Ragged path: keep the original row-major layout (no pad/concat copies).
    # The last block dim is the full (unaligned) minor extent; Pallas clips the
    # partial trailing row-block on writeback. Stores are lane-masked, but total
    # HBM traffic stays at the kernel's 3 x n x itemsize.
    if x.ndim >= 2:
        width = orig_shape[-1]
        width_padded = pl.cdiv(width, _LANE) * _LANE
        if width_padded * itemsize <= 8 * _MIB:
            rows = n // width
            x2d = x.reshape(rows, width)       # collapses leading dims: layout-preserving
            block_rows = _choose_block_rows(rows, width_padded * itemsize,
                                            sublane_pack, target_block_bytes)
            z2d, ld2d = _run(x2d, dtype, alpha, block_rows, n, itemsize)
            return z2d.reshape(orig_shape), ld2d.reshape(orig_shape)

    # ---- Slow fallback (ragged 1-D / degenerate shapes only): pad flat tail.
    # TODO(synk): a masked in-kernel tail store would avoid this copy for huge ragged 1-D inputs.
    xf = x.reshape(-1)
    pad = (-n) % _LANE
    if pad:
        xf = jnp.concatenate([xf, jnp.full((pad,), 0.5, dtype=dtype)])
    n_padded = n + pad
    width = _pick_width(n_padded)
    rows = n_padded // width
    x2d = xf.reshape(rows, width)
    block_rows = _choose_block_rows(rows, width * itemsize, sublane_pack,
                                    target_block_bytes)
    z2d, ld2d = _run(x2d, dtype, alpha, block_rows, n, itemsize)
    z = z2d.reshape(-1)[:n].reshape(orig_shape)
    log_dz = ld2d.reshape(-1)[:n].reshape(orig_shape)
    return z, log_dz


def logit_transform_ref(x, alpha):
    """Pure-JAX reference mirroring the PyTorch forward."""
    xf = x.astype(jnp.float32)
    x_affine = alpha / 2.0 + (1.0 - alpha) * xf
    z = jnp.log(x_affine) - jnp.log(1.0 - x_affine)
    log_dz = math.log(1.0 - alpha) - jnp.log(x_affine) - jnp.log(1.0 - x_affine)
    return z.astype(x.dtype), log_dz.astype(x.dtype)


if __name__ == "__main__":
    alpha = 0.05  # static scalar hyperparameter (from __init__)

    # Case 1: lane-aligned [batch, dim] flow input.
    x = jax.random.uniform(jax.random.PRNGKey(0), (8, 128), dtype=jnp.float32,
                           minval=0.0, maxval=1.0)
    z, log_dz = logit_transform(x, alpha)
    jax.block_until_ready((z, log_dz))
    z_ref, log_dz_ref = logit_transform_ref(x, alpha)
    assert z.shape == x.shape and log_dz.shape == x.shape
    assert jnp.allclose(z, z_ref, atol=1e-5, rtol=1e-5)
    assert jnp.allclose(log_dz, log_dz_ref, atol=1e-5, rtol=1e-5)

    # Case 2: unaligned shape (exercises the copy-free ragged path, grid=1).
    x2 = jax.random.uniform(jax.random.PRNGKey(1), (5, 37), dtype=jnp.float32,
                            minval=0.05, maxval=0.95)
    z2, log_dz2 = logit_transform(x2, alpha)
    jax.block_until_ready((z2, log_dz2))
    z2_ref, log_dz2_ref = logit_transform_ref(x2, alpha)
    assert jnp.allclose(z2, z2_ref, atol=1e-5, rtol=1e-5)
    assert jnp.allclose(log_dz2, log_dz2_ref, atol=1e-5, rtol=1e-5)

    # Case 3: aligned shape that triggers the ">=2 grid steps" split (megacore path).
    x3 = jax.random.uniform(jax.random.PRNGKey(2), (512, 384), dtype=jnp.float32,
                            minval=0.0, maxval=1.0)
    z3, log_dz3 = logit_transform(x3, alpha)
    jax.block_until_ready((z3, log_dz3))
    z3_ref, log_dz3_ref = logit_transform_ref(x3, alpha)
    assert jnp.allclose(z3, z3_ref, atol=1e-5, rtol=1e-5)
    assert jnp.allclose(log_dz3, log_dz3_ref, atol=1e-5, rtol=1e-5)

    print("KERNEL_OK")
</pallas_src>

<mosaic_0001>
module attributes {stable_mosaic.version = 11 : i64} {
  func.func @_logit_transform_kernel(%arg0: i32, %arg1: memref<1x1024xf32, #tpu.memory_space<vmem>>, %arg2: memref<1x1024xf32, #tpu.memory_space<vmem>>, %arg3: memref<1x1024xf32, #tpu.memory_space<vmem>>) attributes {dimension_semantics = [#tpu.dimension_semantics<parallel>], iteration_bounds = array<i64: 1>, scalar_prefetch = 0 : i64, scratch_operands = 0 : i64, tpu.core_type = #tpu.core_type<tc>, window_params = [{transform_indices = @transform_0, window_bounds = array<i64: 1, 1024>}, {transform_indices = @transform_1, window_bounds = array<i64: 1, 1024>}, {transform_indices = @transform_2, window_bounds = array<i64: 1, 1024>}]} {
    %c0 = arith.constant 0 : index
    %c0_0 = arith.constant 0 : index
    %0 = vector.load %arg1[%c0, %c0_0] : memref<1x1024xf32, #tpu.memory_space<vmem>>, vector<1x1024xf32>
    %cst = arith.constant 0.949999988 : f32
    %1 = vector.broadcast %cst : f32 to vector<1x1024xf32>
    %2 = arith.mulf %1, %0 : vector<1x1024xf32>
    %cst_1 = arith.constant 2.500000e-02 : f32
    %3 = vector.broadcast %cst_1 : f32 to vector<1x1024xf32>
    %4 = arith.addf %3, %2 : vector<1x1024xf32>
    %cst_2 = arith.constant 1.000000e+00 : f32
    %5 = vector.broadcast %cst_2 : f32 to vector<1x1024xf32>
    %6 = arith.subf %5, %0 : vector<1x1024xf32>
    %cst_3 = arith.constant 0.949999988 : f32
    %7 = vector.broadcast %cst_3 : f32 to vector<1x1024xf32>
    %8 = arith.mulf %7, %6 : vector<1x1024xf32>
    %cst_4 = arith.constant 2.500000e-02 : f32
    %9 = vector.broadcast %cst_4 : f32 to vector<1x1024xf32>
    %10 = arith.addf %9, %8 : vector<1x1024xf32>
    %11 = math.log %4 : vector<1x1024xf32>
    %12 = math.log %10 : vector<1x1024xf32>
    %13 = arith.subf %11, %12 : vector<1x1024xf32>
    %c0_5 = arith.constant 0 : index
    %c0_6 = arith.constant 0 : index
    %14 = vector.load %arg2[%c0_5, %c0_6] : memref<1x1024xf32, #tpu.memory_space<vmem>>, vector<1x1024xf32>
    tpu.vector_store %arg2[%c0_5, %c0_6], %13 {strides = array<i32>} : memref<1x1024xf32, #tpu.memory_space<vmem>>, vector<1x1024xf32>,
    %cst_7 = arith.constant -0.0512932949 : f32
    %15 = vector.broadcast %cst_7 : f32 to vector<1x1024xf32>
    %16 = arith.subf %15, %11 : vector<1x1024xf32>
    %17 = arith.subf %16, %12 : vector<1x1024xf32>
    %c0_8 = arith.constant 0 : index
    %c0_9 = arith.constant 0 : index
    %18 = vector.load %arg3[%c0_8, %c0_9] : memref<1x1024xf32, #tpu.memory_space<vmem>>, vector<1x1024xf32>
    tpu.vector_store %arg3[%c0_8, %c0_9], %17 {strides = array<i32>} : memref<1x1024xf32, #tpu.memory_space<vmem>>, vector<1x1024xf32>,
    return
  }
  func.func @transform_0(%arg0: i32) -> (i32, i32) {
    %c0_i32 = arith.constant 0 : i32
    %c0_i32_0 = arith.constant 0 : i32
    return %arg0, %c0_i32 : i32, i32
  }
  func.func @transform_1(%arg0: i32) -> (i32, i32) {
    %c0_i32 = arith.constant 0 : i32
    %c0_i32_0 = arith.constant 0 : i32
    return %arg0, %c0_i32 : i32, i32
  }
  func.func @transform_2(%arg0: i32) -> (i32, i32) {
    %c0_i32 = arith.constant 0 : i32
    %c0_i32_0 = arith.constant 0 : i32
    return %arg0, %c0_i32 : i32, i32
  }
}

</mosaic_0001>

<bundles_post_ra>
// kernel: tpu_custom_call.1
= control target key start
LH: loop header
LB: loop body
LE: loop exit
PB: predicated region body
PF: predicated region fallthrough
CT: control target
= control target key end

     0   :  { %8 = vsyncpa [#allocation3], 0  ;;  %s186_s0 = inlined_call_operand.hbm [shape: f32[1,1024], index: 0, kind: input, shape index: {}]   ;;  %s187_s1 = inlined_call_operand.hbm [shape: f32[1,1024], index: 1, kind: output, shape index: {0}]   ;;  %s188_s2 = inlined_call_operand.hbm [shape: f32[1,1024], index: 2, kind: output, shape index: {1}]  }
   0x1   :  { %9 = vsyncpa [#allocation4], 0 }
   0x2   :  { %10 = vsyncpa [#allocation7], 0  ;;  %s16_s11 = sshll.u32 %s186_s0, 4  ;;  %s159_s12 = smov [#allocation2]   ;;  %s17_s11 = int_to_ptr.hbm [resolvable:$true] %s16_s11 }
   0x3   :  { %s18_s13 = sshll.u32 %s159_s12, 4  ;;  %s19_s13 = int_to_ptr.vmem [resolvable:$true] %s18_s13 }
   0x4   :  { %21 = dma.hbm_to_vmem [thread:$0]  %s17_s11, 128, %s19_s13, [#allocation3]  }
   0x5   :  { %153 = dma.done.wait [#allocation3], 128  }
   0x6   :  { %154 = vsyncadd [#allocation3], 4294967168  ;;  %v26_v0 = vld [vmem:[#allocation2] sm:$0xff]  ;;  %s160_s14 = smov [#allocation5]   ;;  %s48_s17 = sshll.u32 %s187_s1, 4  ;;  %s49_s17 = int_to_ptr.hbm [resolvable:$true] %s48_s17 }
   0x7   :  { %v27_v1 = vmul.f32 0.95, %v26_v0  ;;  %v29_v2 = vsub.f32 1.0, %v26_v0  ;;  %s46_s0 = sshll.u32 %s160_s14, 4  ;;  %s161_s18 = smov [#allocation6]   ;;  %s47_s0 = int_to_ptr.vmem [resolvable:$true] %s46_s0 }
   0x8   :  { %s57_s19 = sshll.u32 %s161_s18, 4  ;;  %s59_s22 = sshll.u32 %s188_s2, 4  ;;  %s58_s19 = int_to_ptr.vmem [resolvable:$true] %s57_s19  ;;  %s60_s22 = int_to_ptr.hbm [resolvable:$true] %s59_s22 }
   0x9   :  { %v28_v3 = vadd.f32 0.025, %v27_v1  ;;  %v30_v4 = vmul.f32 0.95, %v29_v2 }
   0xb   :  { %v31_v5 = vadd.f32 0.025, %v30_v4  ;;  %77 = vlog2.f32 %v28_v3 }
   0xd   :  { %79 = vlog2.f32 %v31_v5 }
  0x11   :  { %v78_v6 = vpop.eup %77 }
  0x12   :  { %v33_v7 = vmul.f32 0.6931472, %v78_v6 }
  0x13   :  { %v80_v8 = vpop.eup %79 }
  0x14   :  { %v35_v9 = vmul.f32 0.6931472, %v80_v8  ;;  %v38_v10 = vsub.f32 -0.051293295, %v33_v7 }
  0x16   :  { %v36_v11 = vsub.f32 %v33_v7, %v35_v9  ;;  %v39_v12 = vsub.f32 %v38_v10, %v35_v9 }
  0x18   :  { %37 = vst [vmem:[#allocation5] sm:$0xff] %v36_v11 }
  0x19   :  { %40 = vst [vmem:[#allocation6] sm:$0xff] %v39_v12  ;;  %51 = dma.vmem_to_hbm [thread:$0]  %s47_s0, 128, %s49_s17, [#allocation4]  }
  0x1a   :  { %62 = dma.vmem_to_hbm [thread:$0]  %s58_s19, 128, %s60_s22, [#allocation7]  }
  0x1b   :  { %155 = dma.done.wait [#allocation4], 128  }
  0x1c   :  { %156 = vsyncadd [#allocation4], 4294967168 }
  0x1d   :  { %157 = dma.done.wait [#allocation7], 128  }
  0x1e   :  { %158 = vsyncadd [#allocation7], 4294967168 }
  0x1f   :  { %71 = vsyncpa [#allocation3], 1 }
  0x20   :  { %72 = vsyncpa [#allocation4], 1 }
  0x21   :  { %73 = vsyncpa [#allocation7], 1 }

</bundles_post_ra>
